<compile_context>
chip_gen: v5e
topology: v5e:2x2
jax: 0.10.0
libtpu: 0.0.40
codegen_flags: <defaults>
</compile_context>

<pallas_src>
import jax
import jax.numpy as jnp
from jax import lax
from jax.experimental import pallas as pl
from jax.experimental.pallas import tpu as pltpu

NUM_FEAT = 3
UNSQUEEZE = 16
HIDDEN = NUM_FEAT * UNSQUEEZE  # 48

# constants baked into the PyTorch forward()
_C0 = 0.49598983
_C1 = -0.38875134
_C2 = 0.46353632


def _pick_row_tile(hp):
    """Largest divisor of hp that is <=128 and a multiple of 8 (else full hp)."""
    for cand in range(min(hp, 128), 0, -1):
        if hp % cand == 0 and cand % 8 == 0:
            return cand
    return hp


def _prior_projection_kernel(x_ref, sel_ref, w1t_ref, b1_ref, w2_ref, b2_ref,
                             wfc_ref, bfc_ref, o_ref,
                             r_wide_ref, gb_wide_ref, csum_ref):
    # x_ref block: (1, C, row_tile, 2*W).  For pooled row hp, lanes [0:W] hold
    # input row 2*hp and lanes [W:2W] hold input row 2*hp+1 (free view), so the
    # H-direction pool is a lane-slice max; the W-direction pool is a
    # shift-by-one lane max kept in "wide" layout (valid values on even lanes).
    hp, w = r_wide_ref.shape          # full pooled height, original width
    rt = x_ref.shape[2]               # pooled rows in this tile
    wp = o_ref.shape[2]
    r_step = pl.program_id(1)
    n_row_steps = pl.num_programs(1)

    @pl.when(r_step == 0)
    def _init():
        csum_ref[...] = jnp.zeros_like(csum_ref)

    row0 = r_step * rt
    if rt % 8 == 0:
        row0 = pl.multiple_of(row0, 8)

    def pooled_wide(c):
        xc = x_ref[0, c]                               # (rt, 2*w)
        xh = jnp.maximum(xc[:, :w], xc[:, w:])         # H-pair max -> (rt, w)
        # W-pair max in wide layout: even lane 2*j holds the 2x2 pooled value
        # for output column j; odd lanes are don't-care.
        return jnp.maximum(xh, jnp.roll(xh, shift=-1, axis=1))

    # ---- phase A: pool this row tile, accumulate per-channel column sums ----
    # (g and b first so their temporaries die before r's.)
    m_g = pooled_wide(1)
    csum_ref[1:2, :] = csum_ref[1:2, :] + jnp.sum(m_g, axis=0, keepdims=True)
    m_b = pooled_wide(2)
    csum_ref[2:3, :] = csum_ref[2:3, :] + jnp.sum(m_b, axis=0, keepdims=True)
    gb_wide_ref[pl.ds(row0, rt), :] = jnp.maximum(m_g, m_b)
    m_r = pooled_wide(0)
    csum_ref[0:1, :] = csum_ref[0:1, :] + jnp.sum(m_r, axis=0, keepdims=True)
    r_wide_ref[pl.ds(row0, rt), :] = m_r

    # ---- phase B (last row tile): means -> MLP -> elementwise -> compaction --
    @pl.when(r_step == n_row_steps - 1)
    def _finalize():
        lane = lax.broadcasted_iota(jnp.int32, (1, w), 1)
        even = (lane & 1) == 0
        inv_hw = 1.0 / float(hp * wp)

        def ch_mean(c):  # AdaptiveAvgPool2d(1): spatial mean of the pooled map
            s = jnp.where(even, csum_ref[c:c + 1, :], 0.0)
            return jnp.sum(s, axis=1, keepdims=True) * inv_hw     # (1, 1)

        m0, m1, m2 = ch_mean(0), ch_mean(1), ch_mean(2)

        # Channel attention Conv2d(3,48,1x1) -> ReLU -> Conv2d(48,3,1x1), then
        # fc Linear(3,3).  Unrolled over C=3 on the VPU (no tiny MXU matmuls).
        h = (m0 * w1t_ref[0:1, :] + m1 * w1t_ref[1:2, :]
             + m2 * w1t_ref[2:3, :] + b1_ref[...])                 # (1, 48)
        h = jnp.maximum(h, 0.0)
        attn = jnp.sum(w2_ref[...] * h, axis=1, keepdims=True) + b2_ref[...]  # (3, 1)
        mu = (attn[0:1, 0:1] * wfc_ref[:, 0:1]
              + attn[1:2, 0:1] * wfc_ref[:, 1:2]
              + attn[2:3, 0:1] * wfc_ref[:, 2:3] + bfc_ref[...])   # (3, 1)

        u0 = _C0 + mu[0:1, 0:1]
        u1 = _C1 + mu[1:2, 0:1]
        u2 = _C2 + mu[2:3, 0:1]

        # depth_prior = u0*r + u1*max(g,b) + u2 (broadcast add; no ones buffer)
        dp = u0 * r_wide_ref[...] + u1 * gb_wide_ref[...] + u2     # (hp, w) wide
        dp = jnp.clip(dp, 0.0, 1.0)
        wide = 1.0 - dp

        # Exact even-lane compaction via a 0/1 selection matmul: split the f32
        # values into three bf16 chunks so every MXU product is exact (value
        # times exactly 0/1, one nonzero per output column, f32 accumulate).
        sel = sel_ref[...]                                         # (w, wp) bf16
        hi = wide.astype(jnp.bfloat16)
        res1 = wide - hi.astype(jnp.float32)
        mid = res1.astype(jnp.bfloat16)
        lo = (res1 - mid.astype(jnp.float32)).astype(jnp.bfloat16)
        out = (jnp.dot(hi, sel, preferred_element_type=jnp.float32)
               + jnp.dot(mid, sel, preferred_element_type=jnp.float32)
               + jnp.dot(lo, sel, preferred_element_type=jnp.float32))
        o_ref[0] = out.astype(o_ref.dtype)


def prior_projection(rgb, params, *, row_tile=None):
    """rgb: (N, 3, H, W) float32 -> depth prior (N, 1, H/2, W/2)."""
    w1, b1, w2, b2, wfc, bfc = params
    N, C, H, W = rgb.shape
    assert C == NUM_FEAT
    assert H % 2 == 0 and W % 2 == 0, "MaxPool2d(2,2) requires even H and W"
    Hp, Wp = H // 2, W // 2

    if row_tile is None:
        row_tile = _pick_row_tile(Hp)
    assert Hp % row_tile == 0
    assert row_tile % 8 == 0 or row_tile == Hp
    n_row_tiles = Hp // row_tile

    # Free, contiguity-preserving view: adjacent input-row pair side by side
    # along the lane dim.  No extra HBM traffic (single fused pass in-kernel).
    xw = rgb.reshape(N, C, Hp, 2 * W)

    # 0/1 selection matrix for the final even-lane compaction (exact in bf16).
    sel = (jnp.arange(W)[:, None] == 2 * jnp.arange(Wp)[None, :]).astype(jnp.bfloat16)

    # Tiny weights, pre-arranged for the VPU-unrolled MLP.
    w1t = jnp.transpose(w1)                  # (3, 48)
    b1r = b1.reshape(1, HIDDEN)              # (1, 48)
    b2r = b2.reshape(NUM_FEAT, 1)            # (3, 1)
    bfcr = bfc.reshape(NUM_FEAT, 1)          # (3, 1)

    # Dimension semantics: images are independent (parallel / core-parallel on
    # v7x's two TensorCores); the row axis carries accumulator scratch.
    dev_kind = jax.devices()[0].device_kind.lower()
    if (("v7" in dev_kind) or ("7x" in dev_kind)) and N >= 2:
        dims = (pltpu.CORE_PARALLEL, pltpu.ARBITRARY)
    else:
        dims = ("parallel", "arbitrary")

    # Right-size the scoped VMEM limit from the actual footprint (double-
    # buffered blocks + persistent scratch + phase-B temporaries) + headroom.
    fp32 = 4
    in_block = C * row_tile * 2 * W * fp32
    out_block = Hp * Wp * fp32
    sel_bytes = W * Wp * 2
    scratch_bytes = (2 * Hp * W + C * W) * fp32
    temp_bytes = 4 * Hp * W * fp32
    est = (2 * in_block + 2 * out_block + 2 * sel_bytes
           + scratch_bytes + temp_bytes + (1 << 20))
    vmem_limit = int(min(max(2 * est, 8 * 2**20), 96 * 2**20))

    out = pl.pallas_call(
        _prior_projection_kernel,
        out_shape=jax.ShapeDtypeStruct((N, Hp, Wp), jnp.float32),
        grid_spec=pltpu.PrefetchScalarGridSpec(
            num_scalar_prefetch=0,
            grid=(N, n_row_tiles),
            in_specs=[
                pl.BlockSpec((1, C, row_tile, 2 * W), lambda n, r: (n, 0, r, 0)),
                pl.BlockSpec((W, Wp), lambda n, r: (0, 0)),
                pl.BlockSpec((C, HIDDEN), lambda n, r: (0, 0)),
                pl.BlockSpec((1, HIDDEN), lambda n, r: (0, 0)),
                pl.BlockSpec((C, HIDDEN), lambda n, r: (0, 0)),
                pl.BlockSpec((C, 1), lambda n, r: (0, 0)),
                pl.BlockSpec((C, C), lambda n, r: (0, 0)),
                pl.BlockSpec((C, 1), lambda n, r: (0, 0)),
            ],
            out_specs=pl.BlockSpec((1, Hp, Wp), lambda n, r: (n, 0, 0)),
            scratch_shapes=[
                pltpu.VMEM((Hp, W), jnp.float32),   # pooled r, wide layout
                pltpu.VMEM((Hp, W), jnp.float32),   # pooled max(g,b), wide layout
                pltpu.VMEM((C, W), jnp.float32),    # per-channel column sums
            ],
        ),
        compiler_params=pltpu.CompilerParams(
            dimension_semantics=dims,
            vmem_limit_bytes=vmem_limit,
        ),
    )(xw, sel, w1t, b1r, w2, b2r, wfc, bfcr)
    return out[:, None]                              # (N, 1, Hp, Wp)


def init_params(key):
    # Shapes follow the PyTorch __init__:
    #   Conv2d(3, 48, 1x1): weight (48, 3), bias (48,)
    #   Conv2d(48, 3, 1x1): weight (3, 48), bias (3,)
    #   Linear(3, 3):       weight (3, 3),  bias (3,)
    # NOTE: the original module zero-inits these via zero_module(); small
    # non-zero values are used here so the MLP path is actually exercised.
    k1, k2, k3, k4, k5, k6 = jax.random.split(key, 6)
    w1 = 0.05 * jax.random.normal(k1, (HIDDEN, NUM_FEAT), jnp.float32)
    b1 = 0.05 * jax.random.normal(k2, (HIDDEN,), jnp.float32)
    w2 = 0.05 * jax.random.normal(k3, (NUM_FEAT, HIDDEN), jnp.float32)
    b2 = 0.05 * jax.random.normal(k4, (NUM_FEAT,), jnp.float32)
    wfc = 0.05 * jax.random.normal(k5, (NUM_FEAT, NUM_FEAT), jnp.float32)
    bfc = 0.05 * jax.random.normal(k6, (NUM_FEAT,), jnp.float32)
    return (w1, b1, w2, b2, wfc, bfc)


def reference(rgb, params):
    """Pure-JAX reference mirroring the PyTorch forward()."""
    w1, b1, w2, b2, wfc, bfc = params
    N, C, H, W = rgb.shape
    pooled = jnp.max(rgb.reshape(N, C, H // 2, 2, W // 2, 2), axis=(3, 5))
    mean = jnp.mean(pooled, axis=(2, 3))                        # (N, C)
    h = jnp.maximum(mean @ w1.T + b1, 0.0)
    attn = h @ w2.T + b2
    mu = attn @ wfc.T + bfc                                     # (N, C)
    u = mu + jnp.array([_C0, _C1, _C2], jnp.float32)
    r, g, b = pooled[:, 0], pooled[:, 1], pooled[:, 2]
    dp = (u[:, 0, None, None] * r
          + u[:, 1, None, None] * jnp.maximum(g, b)
          + u[:, 2, None, None])
    dp = jnp.clip(dp, 0.0, 1.0)
    return (1.0 - dp)[:, None]


if __name__ == "__main__":
    key = jax.random.PRNGKey(0)
    kx, kp, kx2 = jax.random.split(key, 3)
    params = init_params(kp)

    # Primary small test (stand-in for the Nx3x480x640 production inputs).
    rgb = jax.random.uniform(kx, (2, NUM_FEAT, 16, 16), dtype=jnp.float32)
    out = jax.block_until_ready(prior_projection(rgb, params))
    ref = reference(rgb, params)
    assert out.shape == (2, 1, 8, 8), out.shape
    assert jnp.allclose(out, ref, atol=1e-5, rtol=1e-5), \
        float(jnp.max(jnp.abs(out - ref)))

    # Exercise the multi-row-tile accumulation path (grid=(1, 2)) and N=1.
    rgb2 = jax.random.uniform(kx2, (1, NUM_FEAT, 32, 32), dtype=jnp.float32)
    out2 = jax.block_until_ready(prior_projection(rgb2, params, row_tile=8))
    ref2 = reference(rgb2, params)
    assert out2.shape == (1, 1, 16, 16), out2.shape
    assert jnp.allclose(out2, ref2, atol=1e-5, rtol=1e-5), \
        float(jnp.max(jnp.abs(out2 - ref2)))

    print("KERNEL_OK")
</pallas_src>

<mosaic_0001>
module attributes {stable_mosaic.version = 11 : i64} {
  func.func @_prior_projection_kernel(%arg0: i32, %arg1: i32, %arg2: memref<1x3x8x32xf32, #tpu.memory_space<vmem>>, %arg3: memref<16x8xbf16, #tpu.memory_space<vmem>>, %arg4: memref<3x48xf32, #tpu.memory_space<vmem>>, %arg5: memref<1x48xf32, #tpu.memory_space<vmem>>, %arg6: memref<3x48xf32, #tpu.memory_space<vmem>>, %arg7: memref<3x1xf32, #tpu.memory_space<vmem>>, %arg8: memref<3x3xf32, #tpu.memory_space<vmem>>, %arg9: memref<3x1xf32, #tpu.memory_space<vmem>>, %arg10: memref<1x8x8xf32, #tpu.memory_space<vmem>>, %arg11: memref<8x16xf32, #tpu.memory_space<vmem>>, %arg12: memref<8x16xf32, #tpu.memory_space<vmem>>, %arg13: memref<3x16xf32, #tpu.memory_space<vmem>>) attributes {dimension_semantics = [#tpu.dimension_semantics<parallel>, #tpu.dimension_semantics<arbitrary>], iteration_bounds = array<i64: 2, 1>, scalar_prefetch = 0 : i64, scratch_operands = 3 : i64, tpu.core_type = #tpu.core_type<tc>, window_params = [{transform_indices = @transform_0, window_bounds = array<i64: 1, 3, 8, 32>}, {pipeline_mode = #tpu.pipeline_mode<synchronous>, transform_indices = @transform_1, window_bounds = array<i64: 16, 8>}, {pipeline_mode = #tpu.pipeline_mode<synchronous>, transform_indices = @transform_2, window_bounds = array<i64: 3, 48>}, {pipeline_mode = #tpu.pipeline_mode<synchronous>, transform_indices = @transform_3, window_bounds = array<i64: 1, 48>}, {pipeline_mode = #tpu.pipeline_mode<synchronous>, transform_indices = @transform_4, window_bounds = array<i64: 3, 48>}, {pipeline_mode = #tpu.pipeline_mode<synchronous>, transform_indices = @transform_5, window_bounds = array<i64: 3, 1>}, {pipeline_mode = #tpu.pipeline_mode<synchronous>, transform_indices = @transform_6, window_bounds = array<i64: 3, 3>}, {pipeline_mode = #tpu.pipeline_mode<synchronous>, transform_indices = @transform_7, window_bounds = array<i64: 3, 1>}, {transform_indices = @transform_8, window_bounds = array<i64: 1, 8, 8>}]} {
    %c0_i32 = arith.constant 0 : i32
    %0 = arith.cmpi eq, %arg1, %c0_i32 : i32
    %1 = arith.extui %0 : i1 to i32
    %c0_i32_0 = arith.constant 0 : i32
    %2 = arith.cmpi ne, %1, %c0_i32_0 : i32
    scf.if %2 {
      %cst_28 = arith.constant 0.000000e+00 : f32
      %55 = vector.broadcast %cst_28 : f32 to vector<3x16xf32>
      %c0_29 = arith.constant 0 : index
      %c0_30 = arith.constant 0 : index
      %56 = vector.load %arg13[%c0_29, %c0_30] : memref<3x16xf32, #tpu.memory_space<vmem>>, vector<3x16xf32>
      tpu.vector_store %arg13[%c0_29, %c0_30], %55 {strides = array<i32>} : memref<3x16xf32, #tpu.memory_space<vmem>>, vector<3x16xf32>,
    } else {
    }
    %c8_i32 = arith.constant 8 : i32
    %3 = arith.muli %arg1, %c8_i32 : i32
    %4 = tpu.assume_multiple %3, 8 : i32
    %c0 = arith.constant 0 : index
    %c1 = arith.constant 1 : index
    %c0_1 = arith.constant 0 : index
    %c0_2 = arith.constant 0 : index
    %5 = vector.load %arg2[%c0, %c1, %c0_1, %c0_2] : memref<1x3x8x32xf32, #tpu.memory_space<vmem>>, vector<1x1x8x32xf32>
    %6 = vector.shape_cast %5 : vector<1x1x8x32xf32> to vector<8x32xf32>
    %7 = vector.extract_strided_slice %6 {offsets = [0, 0], sizes = [8, 16], strides = [1, 1]} : vector<8x32xf32> to vector<8x16xf32>
    %8 = vector.extract_strided_slice %6 {offsets = [0, 16], sizes = [8, 16], strides = [1, 1]} : vector<8x32xf32> to vector<8x16xf32>
    %9 = arith.maximumf %7, %8 : vector<8x16xf32>
    %10 = vector.extract_strided_slice %9 {offsets = [0, 1], sizes = [8, 15], strides = [1, 1]} : vector<8x16xf32> to vector<8x15xf32>
    %11 = vector.extract_strided_slice %9 {offsets = [0, 0], sizes = [8, 1], strides = [1, 1]} : vector<8x16xf32> to vector<8x1xf32>
    %12 = tpu.concatenate %10, %11 in 1 : vector<8x15xf32>, vector<8x1xf32> -> vector<8x16xf32>
    %13 = arith.maximumf %9, %12 : vector<8x16xf32>
    %c1_3 = arith.constant 1 : index
    %c0_4 = arith.constant 0 : index
    %14 = vector.load %arg13[%c1_3, %c0_4] : memref<3x16xf32, #tpu.memory_space<vmem>>, vector<1x16xf32>
    %cst = arith.constant dense<0.000000e+00> : vector<16xf32>
    %15 = vector.multi_reduction <add>, %13, %cst [0] : vector<8x16xf32> to vector<16xf32>
    %16 = vector.shape_cast %15 : vector<16xf32> to vector<1x16xf32>
    %17 = arith.addf %14, %16 : vector<1x16xf32>
    %c1_5 = arith.constant 1 : index
    %c0_6 = arith.constant 0 : index
    %18 = vector.load %arg13[%c1_5, %c0_6] : memref<3x16xf32, #tpu.memory_space<vmem>>, vector<1x16xf32>
    tpu.vector_store %arg13[%c1_5, %c0_6], %17 {strides = array<i32>} : memref<3x16xf32, #tpu.memory_space<vmem>>, vector<1x16xf32>,
    %c0_7 = arith.constant 0 : index
    %c2 = arith.constant 2 : index
    %c0_8 = arith.constant 0 : index
    %c0_9 = arith.constant 0 : index
    %19 = vector.load %arg2[%c0_7, %c2, %c0_8, %c0_9] : memref<1x3x8x32xf32, #tpu.memory_space<vmem>>, vector<1x1x8x32xf32>
    %20 = vector.shape_cast %19 : vector<1x1x8x32xf32> to vector<8x32xf32>
    %21 = vector.extract_strided_slice %20 {offsets = [0, 0], sizes = [8, 16], strides = [1, 1]} : vector<8x32xf32> to vector<8x16xf32>
    %22 = vector.extract_strided_slice %20 {offsets = [0, 16], sizes = [8, 16], strides = [1, 1]} : vector<8x32xf32> to vector<8x16xf32>
    %23 = arith.maximumf %21, %22 : vector<8x16xf32>
    %24 = vector.extract_strided_slice %23 {offsets = [0, 1], sizes = [8, 15], strides = [1, 1]} : vector<8x16xf32> to vector<8x15xf32>
    %25 = vector.extract_strided_slice %23 {offsets = [0, 0], sizes = [8, 1], strides = [1, 1]} : vector<8x16xf32> to vector<8x1xf32>
    %26 = tpu.concatenate %24, %25 in 1 : vector<8x15xf32>, vector<8x1xf32> -> vector<8x16xf32>
    %27 = arith.maximumf %23, %26 : vector<8x16xf32>
    %c2_10 = arith.constant 2 : index
    %c0_11 = arith.constant 0 : index
    %28 = vector.load %arg13[%c2_10, %c0_11] : memref<3x16xf32, #tpu.memory_space<vmem>>, vector<1x16xf32>
    %cst_12 = arith.constant dense<0.000000e+00> : vector<16xf32>
    %29 = vector.multi_reduction <add>, %27, %cst_12 [0] : vector<8x16xf32> to vector<16xf32>
    %30 = vector.shape_cast %29 : vector<16xf32> to vector<1x16xf32>
    %31 = arith.addf %28, %30 : vector<1x16xf32>
    %c2_13 = arith.constant 2 : index
    %c0_14 = arith.constant 0 : index
    %32 = vector.load %arg13[%c2_13, %c0_14] : memref<3x16xf32, #tpu.memory_space<vmem>>, vector<1x16xf32>
    tpu.vector_store %arg13[%c2_13, %c0_14], %31 {strides = array<i32>} : memref<3x16xf32, #tpu.memory_space<vmem>>, vector<1x16xf32>,
    %33 = arith.maximumf %13, %27 : vector<8x16xf32>
    %34 = arith.index_cast %4 : i32 to index
    %c0_15 = arith.constant 0 : index
    %35 = vector.load %arg12[%34, %c0_15] : memref<8x16xf32, #tpu.memory_space<vmem>>, vector<8x16xf32>
    tpu.vector_store %arg12[%34, %c0_15], %33 {strides = array<i32>} : memref<8x16xf32, #tpu.memory_space<vmem>>, vector<8x16xf32>,
    %c0_16 = arith.constant 0 : index
    %c0_17 = arith.constant 0 : index
    %c0_18 = arith.constant 0 : index
    %c0_19 = arith.constant 0 : index
    %36 = vector.load %arg2[%c0_16, %c0_17, %c0_18, %c0_19] : memref<1x3x8x32xf32, #tpu.memory_space<vmem>>, vector<1x1x8x32xf32>
    %37 = vector.shape_cast %36 : vector<1x1x8x32xf32> to vector<8x32xf32>
    %38 = vector.extract_strided_slice %37 {offsets = [0, 0], sizes = [8, 16], strides = [1, 1]} : vector<8x32xf32> to vector<8x16xf32>
    %39 = vector.extract_strided_slice %37 {offsets = [0, 16], sizes = [8, 16], strides = [1, 1]} : vector<8x32xf32> to vector<8x16xf32>
    %40 = arith.maximumf %38, %39 : vector<8x16xf32>
    %41 = vector.extract_strided_slice %40 {offsets = [0, 1], sizes = [8, 15], strides = [1, 1]} : vector<8x16xf32> to vector<8x15xf32>
    %42 = vector.extract_strided_slice %40 {offsets = [0, 0], sizes = [8, 1], strides = [1, 1]} : vector<8x16xf32> to vector<8x1xf32>
    %43 = tpu.concatenate %41, %42 in 1 : vector<8x15xf32>, vector<8x1xf32> -> vector<8x16xf32>
    %44 = arith.maximumf %40, %43 : vector<8x16xf32>
    %c0_20 = arith.constant 0 : index
    %c0_21 = arith.constant 0 : index
    %45 = vector.load %arg13[%c0_20, %c0_21] : memref<3x16xf32, #tpu.memory_space<vmem>>, vector<1x16xf32>
    %cst_22 = arith.constant dense<0.000000e+00> : vector<16xf32>
    %46 = vector.multi_reduction <add>, %44, %cst_22 [0] : vector<8x16xf32> to vector<16xf32>
    %47 = vector.shape_cast %46 : vector<16xf32> to vector<1x16xf32>
    %48 = arith.addf %45, %47 : vector<1x16xf32>
    %c0_23 = arith.constant 0 : index
    %c0_24 = arith.constant 0 : index
    %49 = vector.load %arg13[%c0_23, %c0_24] : memref<3x16xf32, #tpu.memory_space<vmem>>, vector<1x16xf32>
    tpu.vector_store %arg13[%c0_23, %c0_24], %48 {strides = array<i32>} : memref<3x16xf32, #tpu.memory_space<vmem>>, vector<1x16xf32>,
    %50 = arith.index_cast %4 : i32 to index
    %c0_25 = arith.constant 0 : index
    %51 = vector.load %arg11[%50, %c0_25] : memref<8x16xf32, #tpu.memory_space<vmem>>, vector<8x16xf32>
    tpu.vector_store %arg11[%50, %c0_25], %44 {strides = array<i32>} : memref<8x16xf32, #tpu.memory_space<vmem>>, vector<8x16xf32>,
    %c0_i32_26 = arith.constant 0 : i32
    %52 = arith.cmpi eq, %arg1, %c0_i32_26 : i32
    %53 = arith.extui %52 : i1 to i32
    %c0_i32_27 = arith.constant 0 : i32
    %54 = arith.cmpi ne, %53, %c0_i32_27 : i32
    scf.if %54 {
      %55 = tpu.iota {dimensions = array<i32: 1>} : vector<1x16xi32>
      %c1_i32 = arith.constant 1 : i32
      %56 = vector.broadcast %c1_i32 : i32 to vector<1x16xi32>
      %57 = arith.andi %55, %56 : vector<1x16xi32>
      %c0_i32_28 = arith.constant 0 : i32
      %58 = vector.broadcast %c0_i32_28 : i32 to vector<1x16xi32>
      %59 = arith.cmpi eq, %57, %58 : vector<1x16xi32>
      %c0_29 = arith.constant 0 : index
      %c0_30 = arith.constant 0 : index
      %60 = vector.load %arg13[%c0_29, %c0_30] : memref<3x16xf32, #tpu.memory_space<vmem>>, vector<1x16xf32>
      %cst_31 = arith.constant 0.000000e+00 : f32
      %61 = vector.broadcast %cst_31 : f32 to vector<1x16xf32>
      %62 = arith.select %59, %60, %61 : vector<1x16xi1>, vector<1x16xf32>
      %cst_32 = arith.constant dense<0.000000e+00> : vector<1xf32>
      %63 = vector.multi_reduction <add>, %62, %cst_32 [1] : vector<1x16xf32> to vector<1xf32>
      %64 = vector.shape_cast %63 : vector<1xf32> to vector<1x1xf32>
      %cst_33 = arith.constant 1.562500e-02 : f32
      %65 = vector.broadcast %cst_33 : f32 to vector<1x1xf32>
      %66 = arith.mulf %64, %65 : vector<1x1xf32>
      %c1_34 = arith.constant 1 : index
      %c0_35 = arith.constant 0 : index
      %67 = vector.load %arg13[%c1_34, %c0_35] : memref<3x16xf32, #tpu.memory_space<vmem>>, vector<1x16xf32>
      %cst_36 = arith.constant 0.000000e+00 : f32
      %68 = vector.broadcast %cst_36 : f32 to vector<1x16xf32>
      %69 = arith.select %59, %67, %68 : vector<1x16xi1>, vector<1x16xf32>
      %cst_37 = arith.constant dense<0.000000e+00> : vector<1xf32>
      %70 = vector.multi_reduction <add>, %69, %cst_37 [1] : vector<1x16xf32> to vector<1xf32>
      %71 = vector.shape_cast %70 : vector<1xf32> to vector<1x1xf32>
      %cst_38 = arith.constant 1.562500e-02 : f32
      %72 = vector.broadcast %cst_38 : f32 to vector<1x1xf32>
      %73 = arith.mulf %71, %72 : vector<1x1xf32>
      %c2_39 = arith.constant 2 : index
      %c0_40 = arith.constant 0 : index
      %74 = vector.load %arg13[%c2_39, %c0_40] : memref<3x16xf32, #tpu.memory_space<vmem>>, vector<1x16xf32>
      %cst_41 = arith.constant 0.000000e+00 : f32
      %75 = vector.broadcast %cst_41 : f32 to vector<1x16xf32>
      %76 = arith.select %59, %74, %75 : vector<1x16xi1>, vector<1x16xf32>
      %cst_42 = arith.constant dense<0.000000e+00> : vector<1xf32>
      %77 = vector.multi_reduction <add>, %76, %cst_42 [1] : vector<1x16xf32> to vector<1xf32>
      %78 = vector.shape_cast %77 : vector<1xf32> to vector<1x1xf32>
      %cst_43 = arith.constant 1.562500e-02 : f32
      %79 = vector.broadcast %cst_43 : f32 to vector<1x1xf32>
      %80 = arith.mulf %78, %79 : vector<1x1xf32>
      %c0_44 = arith.constant 0 : index
      %c0_45 = arith.constant 0 : index
      %81 = vector.load %arg4[%c0_44, %c0_45] : memref<3x48xf32, #tpu.memory_space<vmem>>, vector<1x48xf32>
      %82 = vector.broadcast %66 : vector<1x1xf32> to vector<1x48xf32>
      %83 = arith.mulf %82, %81 : vector<1x48xf32>
      %c1_46 = arith.constant 1 : index
      %c0_47 = arith.constant 0 : index
      %84 = vector.load %arg4[%c1_46, %c0_47] : memref<3x48xf32, #tpu.memory_space<vmem>>, vector<1x48xf32>
      %85 = vector.broadcast %73 : vector<1x1xf32> to vector<1x48xf32>
      %86 = arith.mulf %85, %84 : vector<1x48xf32>
      %87 = arith.addf %83, %86 : vector<1x48xf32>
      %c2_48 = arith.constant 2 : index
      %c0_49 = arith.constant 0 : index
      %88 = vector.load %arg4[%c2_48, %c0_49] : memref<3x48xf32, #tpu.memory_space<vmem>>, vector<1x48xf32>
      %89 = vector.broadcast %80 : vector<1x1xf32> to vector<1x48xf32>
      %90 = arith.mulf %89, %88 : vector<1x48xf32>
      %91 = arith.addf %87, %90 : vector<1x48xf32>
      %c0_50 = arith.constant 0 : index
      %c0_51 = arith.constant 0 : index
      %92 = vector.load %arg5[%c0_50, %c0_51] : memref<1x48xf32, #tpu.memory_space<vmem>>, vector<1x48xf32>
      %93 = arith.addf %91, %92 : vector<1x48xf32>
      %cst_52 = arith.constant 0.000000e+00 : f32
      %94 = vector.broadcast %cst_52 : f32 to vector<1x48xf32>
      %95 = arith.maximumf %93, %94 : vector<1x48xf32>
      %c0_53 = arith.constant 0 : index
      %c0_54 = arith.constant 0 : index
      %96 = vector.load %arg6[%c0_53, %c0_54] : memref<3x48xf32, #tpu.memory_space<vmem>>, vector<3x48xf32>
      %97 = vector.broadcast %95 : vector<1x48xf32> to vector<3x48xf32>
      %98 = arith.mulf %96, %97 : vector<3x48xf32>
      %cst_55 = arith.constant dense<0.000000e+00> : vector<3xf32>
      %99 = vector.multi_reduction <add>, %98, %cst_55 [1] : vector<3x48xf32> to vector<3xf32>
      %100 = vector.shape_cast %99 : vector<3xf32> to vector<3x1xf32>
      %c0_56 = arith.constant 0 : index
      %c0_57 = arith.constant 0 : index
      %101 = vector.load %arg7[%c0_56, %c0_57] : memref<3x1xf32, #tpu.memory_space<vmem>>, vector<3x1xf32>
      %102 = arith.addf %100, %101 : vector<3x1xf32>
      %103 = vector.extract_strided_slice %102 {offsets = [0, 0], sizes = [1, 1], strides = [1, 1]} : vector<3x1xf32> to vector<1x1xf32>
      %c0_58 = arith.constant 0 : index
      %c0_59 = arith.constant 0 : index
      %104 = vector.load %arg8[%c0_58, %c0_59] : memref<3x3xf32, #tpu.memory_space<vmem>>, vector<3x1xf32>
      %105 = vector.broadcast %103 : vector<1x1xf32> to vector<3x1xf32>
      %106 = arith.mulf %105, %104 : vector<3x1xf32>
      %107 = vector.extract_strided_slice %102 {offsets = [1, 0], sizes = [1, 1], strides = [1, 1]} : vector<3x1xf32> to vector<1x1xf32>
      %c0_60 = arith.constant 0 : index
      %c1_61 = arith.constant 1 : index
      %108 = vector.load %arg8[%c0_60, %c1_61] : memref<3x3xf32, #tpu.memory_space<vmem>>, vector<3x1xf32>
      %109 = vector.broadcast %107 : vector<1x1xf32> to vector<3x1xf32>
      %110 = arith.mulf %109, %108 : vector<3x1xf32>
      %111 = arith.addf %106, %110 : vector<3x1xf32>
      %112 = vector.extract_strided_slice %102 {offsets = [2, 0], sizes = [1, 1], strides = [1, 1]} : vector<3x1xf32> to vector<1x1xf32>
      %c0_62 = arith.constant 0 : index
      %c2_63 = arith.constant 2 : index
      %113 = vector.load %arg8[%c0_62, %c2_63] : memref<3x3xf32, #tpu.memory_space<vmem>>, vector<3x1xf32>
      %114 = vector.broadcast %112 : vector<1x1xf32> to vector<3x1xf32>
      %115 = arith.mulf %114, %113 : vector<3x1xf32>
      %116 = arith.addf %111, %115 : vector<3x1xf32>
      %c0_64 = arith.constant 0 : index
      %c0_65 = arith.constant 0 : index
      %117 = vector.load %arg9[%c0_64, %c0_65] : memref<3x1xf32, #tpu.memory_space<vmem>>, vector<3x1xf32>
      %118 = arith.addf %116, %117 : vector<3x1xf32>
      %119 = vector.extract_strided_slice %118 {offsets = [0, 0], sizes = [1, 1], strides = [1, 1]} : vector<3x1xf32> to vector<1x1xf32>
      %cst_66 = arith.constant 0.495989829 : f32
      %120 = vector.broadcast %cst_66 : f32 to vector<1x1xf32>
      %121 = arith.addf %120, %119 : vector<1x1xf32>
      %122 = vector.extract_strided_slice %118 {offsets = [1, 0], sizes = [1, 1], strides = [1, 1]} : vector<3x1xf32> to vector<1x1xf32>
      %cst_67 = arith.constant -0.388751328 : f32
      %123 = vector.broadcast %cst_67 : f32 to vector<1x1xf32>
      %124 = arith.addf %123, %122 : vector<1x1xf32>
      %125 = vector.extract_strided_slice %118 {offsets = [2, 0], sizes = [1, 1], strides = [1, 1]} : vector<3x1xf32> to vector<1x1xf32>
      %cst_68 = arith.constant 0.463536322 : f32
      %126 = vector.broadcast %cst_68 : f32 to vector<1x1xf32>
      %127 = arith.addf %126, %125 : vector<1x1xf32>
      %c0_69 = arith.constant 0 : index
      %c0_70 = arith.constant 0 : index
      %128 = vector.load %arg11[%c0_69, %c0_70] : memref<8x16xf32, #tpu.memory_space<vmem>>, vector<8x16xf32>
      %129 = vector.broadcast %121 : vector<1x1xf32> to vector<8x16xf32>
      %130 = arith.mulf %129, %128 : vector<8x16xf32>
      %c0_71 = arith.constant 0 : index
      %c0_72 = arith.constant 0 : index
      %131 = vector.load %arg12[%c0_71, %c0_72] : memref<8x16xf32, #tpu.memory_space<vmem>>, vector<8x16xf32>
      %132 = vector.broadcast %124 : vector<1x1xf32> to vector<8x16xf32>
      %133 = arith.mulf %132, %131 : vector<8x16xf32>
      %134 = arith.addf %130, %133 : vector<8x16xf32>
      %135 = vector.broadcast %127 : vector<1x1xf32> to vector<8x16xf32>
      %136 = arith.addf %134, %135 : vector<8x16xf32>
      %cst_73 = arith.constant 0.000000e+00 : f32
      %cst_74 = arith.constant 1.000000e+00 : f32
      %137 = vector.broadcast %cst_73 : f32 to vector<8x16xf32>
      %138 = arith.maximumf %137, %136 : vector<8x16xf32>
      %139 = vector.broadcast %cst_74 : f32 to vector<8x16xf32>
      %140 = arith.minimumf %139, %138 : vector<8x16xf32>
      %cst_75 = arith.constant 1.000000e+00 : f32
      %141 = vector.broadcast %cst_75 : f32 to vector<8x16xf32>
      %142 = arith.subf %141, %140 : vector<8x16xf32>
      %c0_76 = arith.constant 0 : index
      %c0_77 = arith.constant 0 : index
      %143 = vector.load %arg3[%c0_76, %c0_77] : memref<16x8xbf16, #tpu.memory_space<vmem>>, vector<16x8xbf16>
      %144 = arith.truncf %142 : vector<8x16xf32> to vector<8x16xbf16>
      %145 = arith.extf %144 : vector<8x16xbf16> to vector<8x16xf32>
      %146 = arith.subf %142, %145 : vector<8x16xf32>
      %147 = arith.truncf %146 : vector<8x16xf32> to vector<8x16xbf16>
      %148 = arith.extf %147 : vector<8x16xbf16> to vector<8x16xf32>
      %149 = arith.subf %146, %148 : vector<8x16xf32>
      %150 = arith.truncf %149 : vector<8x16xf32> to vector<8x16xbf16>
      %cst_78 = arith.constant dense<0.000000e+00> : vector<8x8xf32>
      %151 = tpu.matmul %144, %143, %cst_78 {dimension_numbers = #tpu.dot_dimension_numbers<[1], [0], [0], [1], [0, 0, 1, 1], [], []>} : vector<8x16xbf16>, vector<16x8xbf16>, vector<8x8xf32> -> vector<8x8xf32>
      %cst_79 = arith.constant dense<0.000000e+00> : vector<8x8xf32>
      %152 = tpu.matmul %147, %143, %cst_79 {dimension_numbers = #tpu.dot_dimension_numbers<[1], [0], [0], [1], [0, 0, 1, 1], [], []>} : vector<8x16xbf16>, vector<16x8xbf16>, vector<8x8xf32> -> vector<8x8xf32>
      %153 = arith.addf %151, %152 : vector<8x8xf32>
      %cst_80 = arith.constant dense<0.000000e+00> : vector<8x8xf32>
      %154 = tpu.matmul %150, %143, %cst_80 {dimension_numbers = #tpu.dot_dimension_numbers<[1], [0], [0], [1], [0, 0, 1, 1], [], []>} : vector<8x16xbf16>, vector<16x8xbf16>, vector<8x8xf32> -> vector<8x8xf32>
      %155 = arith.addf %153, %154 : vector<8x8xf32>
      %c0_81 = arith.constant 0 : index
      %c0_82 = arith.constant 0 : index
      %c0_83 = arith.constant 0 : index
      %156 = vector.load %arg10[%c0_81, %c0_82, %c0_83] : memref<1x8x8xf32, #tpu.memory_space<vmem>>, vector<1x8x8xf32>
      %157 = vector.shape_cast %156 : vector<1x8x8xf32> to vector<8x8xf32>
      %158 = vector.shape_cast %155 : vector<8x8xf32> to vector<1x8x8xf32>
      tpu.vector_store %arg10[%c0_81, %c0_82, %c0_83], %158 {strides = array<i32>} : memref<1x8x8xf32, #tpu.memory_space<vmem>>, vector<1x8x8xf32>,
    } else {
    }
    return
  }
  func.func @transform_0(%arg0: i32, %arg1: i32) -> (i32, i32, i32, i32) {
    %c0_i32 = arith.constant 0 : i32
    %c0_i32_0 = arith.constant 0 : i32
    %c0_i32_1 = arith.constant 0 : i32
    return %arg0, %c0_i32, %arg1, %c0_i32_0 : i32, i32, i32, i32
  }
  func.func @transform_1(%arg0: i32, %arg1: i32) -> (i32, i32) {
    %c0_i32 = arith.constant 0 : i32
    %c0_i32_0 = arith.constant 0 : i32
    %c0_i32_1 = arith.constant 0 : i32
    return %c0_i32, %c0_i32_0 : i32, i32
  }
  func.func @transform_2(%arg0: i32, %arg1: i32) -> (i32, i32) {
    %c0_i32 = arith.constant 0 : i32
    %c0_i32_0 = arith.constant 0 : i32
    %c0_i32_1 = arith.constant 0 : i32
    return %c0_i32, %c0_i32_0 : i32, i32
  }
  func.func @transform_3(%arg0: i32, %arg1: i32) -> (i32, i32) {
    %c0_i32 = arith.constant 0 : i32
    %c0_i32_0 = arith.constant 0 : i32
    %c0_i32_1 = arith.constant 0 : i32
    return %c0_i32, %c0_i32_0 : i32, i32
  }
  func.func @transform_4(%arg0: i32, %arg1: i32) -> (i32, i32) {
    %c0_i32 = arith.constant 0 : i32
    %c0_i32_0 = arith.constant 0 : i32
    %c0_i32_1 = arith.constant 0 : i32
    return %c0_i32, %c0_i32_0 : i32, i32
  }
  func.func @transform_5(%arg0: i32, %arg1: i32) -> (i32, i32) {
    %c0_i32 = arith.constant 0 : i32
    %c0_i32_0 = arith.constant 0 : i32
    %c0_i32_1 = arith.constant 0 : i32
    return %c0_i32, %c0_i32_0 : i32, i32
  }
  func.func @transform_6(%arg0: i32, %arg1: i32) -> (i32, i32) {
    %c0_i32 = arith.constant 0 : i32
    %c0_i32_0 = arith.constant 0 : i32
    %c0_i32_1 = arith.constant 0 : i32
    return %c0_i32, %c0_i32_0 : i32, i32
  }
  func.func @transform_7(%arg0: i32, %arg1: i32) -> (i32, i32) {
    %c0_i32 = arith.constant 0 : i32
    %c0_i32_0 = arith.constant 0 : i32
    %c0_i32_1 = arith.constant 0 : i32
    return %c0_i32, %c0_i32_0 : i32, i32
  }
  func.func @transform_8(%arg0: i32, %arg1: i32) -> (i32, i32, i32) {
    %c0_i32 = arith.constant 0 : i32
    %c0_i32_0 = arith.constant 0 : i32
    %c0_i32_1 = arith.constant 0 : i32
    return %arg0, %c0_i32, %c0_i32_0 : i32, i32, i32
  }
}

</mosaic_0001>

<bundles_post_ra>
// kernel: tpu_custom_call.1
= control target key start
LH: loop header
LB: loop body
LE: loop exit
PB: predicated region body
PF: predicated region fallthrough
CT: control target
= control target key end

     0   :  { %13 = vsyncpa [#allocation6], 0  ;;  %s1120_s0 = inlined_call_operand.hbm [shape: f32[2,3,8,32], index: 0, kind: input, shape index: {}]   ;;  %s1121_s1 = inlined_call_operand.vmem [shape: bf16[16,8], index: 1, kind: input, shape index: {}]   ;;  %s1122_s2 = inlined_call_operand.vmem [shape: f32[3,48], index: 2, kind: input, shape index: {}]   ;;  %s1123_s3 = inlined_call_operand.vmem [shape: f32[1,48], index: 3, kind: input, shape index: {}]   ;;  %s1124_s4 = inlined_call_operand.vmem [shape: f32[3,48], index: 4, kind: input, shape index: {}]   ;;  %s1125_s5 = inlined_call_operand.vmem [shape: f32[3,1], index: 5, kind: input, shape index: {}]   ;;  %s1126_s6 = inlined_call_operand.vmem [shape: f32[3,3], index: 6, kind: input, shape index: {}]   ;;  %s1127_s7 = inlined_call_operand.vmem [shape: f32[3,1], index: 7, kind: input, shape index: {}]   ;;  %s1128_s8 = inlined_call_operand.hbm [shape: f32[2,8,8], index: 8, kind: output, shape index: {}]  }
   0x1   :  { %15 = vsyncpa [#allocation6 + $0x1], 0 }
   0x2   :  { %16 = vsyncpa [#allocation7], 0 }
   0x3   :  { %18 = vsyncpa [#allocation7 + $0x1], 0  ;;  %s954_s27 = smov 0   ;;  %s956_s28 = smov 0  }
   0x4   :  { %s958_s29 = smov 0   ;;  %s960_s30 = smov 0  }
   0x5   :  { %s962_s9 = smov 0   ;;  %s964_s10 = smov 0  }
   0x6 LB: > { %s689_s11 = sadd.s32 4294967295, %s900_s10   ;;  %s690_s12 = sadd.s32 4294967294, %s900_s10   ;;  %s900_s10 = sphi %s964_s10, %s24_s10   ;;  %s896_s9 = sphi %s962_s9, %s1142_s9   ;;  %s892_s30 = sphi %s960_s30, %s1141_s30   ;;  %s888_s29 = sphi %s958_s29, %s1140_s29   ;;  %s884_s28 = sphi %s956_s28, %s1139_s28   ;;  %s880_s27 = sphi %s954_s27, %s1138_s27  }
   0x7   : > { %s36_s13 = sadd.s32 1, %s896_s9  ;;  %s45_s14 = sadd.s32 1, %s888_s29 }
   0x8   : > { %p38_p0 = scmp.ge.s32.totalorder %s36_s13, 2  ;;  %p52_p1 = scmp.ne.s32.totalorder %s888_s29, %s884_s28 }
   0x9   : > { %p53_p2 = scmp.eq.s32.totalorder %s900_s10, 0  ;;  %p58_p3 = scmp.ne.s32.totalorder %s884_s28, %s880_s27 }
   0xa   : > { %s1144_s13 = smov (%p38_p0, %s36_s13), 0  ;;  %p59_p5 = scmp.eq.s32.totalorder %s689_s11, 0 }
   0xb   : > { %1130 = sst [smem:[#allocation11_spill]] %s1144_s13  ;;  %p995_p4 = por %p53_p2, %p52_p1 }
   0xc   : > { %s40_s16 = ssub.s32 %s896_s9, %s1144_s13  ;;  %p229_p6 = scmp.eq.s32.totalorder %s689_s11, 1 }
   0xd   : > { %p43_p7 = scmp.eq.s32.totalorder %s40_s16, 0  ;;  %p1001_p8 = por %p59_p5, %p58_p3 }
   0xe   : > { %p1005_p9 = por %p229_p6, %p52_p1  ;;  %p235_p10 = scmp.eq.s32.totalorder %s690_s12, 1 }
   0xf   : > { %s1010_s19 = scalar_select %p43_p7, %s888_s29, %s45_s14  }
  0x10   : > { %p1012_p11 = por %p235_p10, %p58_p3  ;;  %p692_p12 = scmp.ge.s32.totalorder %s900_s10, 2 }
  0x11   : > { %1134 = sst [smem:[#allocation12_spill]] %s1010_s19  ;;  %p731_p13 = scmp.lt.s32.totalorder %s900_s10, 2 }
  0x12   : > { %s276_s21 = sand.u32 1, %s888_s29   ;;  %s711_s23 = smul.u32 24, %s896_s9 }
  0x13   : > { %s710_s22 = smul.u32 24, %s276_s21  ;;  %p724_p0 = pnand %p731_p13, %p995_p4 }
  0x14   : > { %s286_s26 = scalar_lea.hbm %s1120_s0, %s711_s23  ;;  %p694_p1 = scmp.ge.s32.totalorder %s900_s10, 1 }
  0x15   : > { %s280_s11 = scalar_lea.vmem [#allocation5], %s710_s22  ;;  %s287_s14 = sshll.u32 %s286_s26, 4  ;;  %s288_s14 = int_to_ptr.hbm [resolvable:$true] %s287_s14 }
  0x16   : > { %s289_s12 = sshll.u32 %s280_s11, 4  ;;  %s277_s16 = scalar_lea.sflag [#allocation6], %s276_s21  ;;  %s290_s12 = int_to_ptr.vmem [resolvable:$true] %s289_s12 }
  0x17   : > { %s902_s13 = smov 128   ;;  %s903_s19 = smov 8  }
  0x18   : > { %726 = dma.hbm_to_vmem [thread:$0]  (!%p724_p0), %s288_s14, 384, %s290_s12, %s277_s16, %s902_s13, %s902_s13, %s903_s19  }
  0x19   : > { %p297_p2 = scmp.lt.s32.totalorder %s900_s10, 3 }
  0x1b   : > { %p298_p3 = pnand %p694_p1, %p297_p2 }
  0x1c   : > { %s1028_s15 = sand.u32 (!%p298_p3), 1, %s884_s28  }
  0x1d   : > { %301 = sbr.rel (%p298_p3) target bundleno = 787 (0x313), region = 52  ;;  %s304_s22 = scalar_lea.sflag (!%p298_p3), [#allocation6], %s1028_s15 }
  0x1e   : > { %s712_s23 = smul.u32 (!%p298_p3), 24, %s1028_s15 }
  0x20   : > { %s307_s24 = scalar_lea.vmem (!%p298_p3), [#allocation5], %s712_s23 }
  0x22   : > { %871 = dma.done.wait (%p1001_p8), %s304_s22, 384  }
  0x23   : > { %873 = vsyncadd (%p1001_p8), %s304_s22, 4294966912  ;;  %v696_v0 = vld [vmem:[%s307_s24 + $0x8] sm:$0xff]  ;;  %v697_v1 = vld [vmem:[%s307_s24 + $0x10] sm:$0xff]  ;;  %s904_s13 = smov 112   ;;  %s905_s19 = smov 15   ;;  %vm346_vm0 = vcmask 124928   ;;  %v437_v30 = vlaneseq }
  0x24   : > { %352 = vrot.lane.b32.xlu0 %v696_v0, %s904_s13  ;;  %381 = vrot.lane.b32.xlu1 %v697_v1, %s904_s13  ;;  %v407_v2 = vld [vmem:[%s307_s24] sm:$0xff]  ;;  %s906_s21 = smov 127   ;;  %v907_v9 = vmov 0.0   ;;  %vm363_vm1 = vcmask 121856   ;;  %vm367_vm2 = vcmask 130048   ;;  %vm376_vm3 = vcmask 122880  }
  0x25   : > { %347 = vst.msk [vmem:[#allocation4] sm:$0x7] %vm346_vm0, %v907_v9  ;;  %v438_v38 = vand.u32 127, %v437_v30  ;;  %v479_v62 = vld [vmem:[%s1126_s6] sm:$0x7]  ;;  %s908_s26 = smov 126  }
  0x26   : > { %vm473_vm5 = vcmask 387072   ;;  %s706_s24 = sshll.u32 %s892_s30, 3  ;;  %vm587_vm6 = vcmask 64512   ;;  %s590_s12 = scalar_lea.sflag [#allocation7], %s1028_s15 }
  0x27   : > { %v439_v44 = vand.u32 1, %v438_v38  ;;  %s600_s17 = scalar_lea.hbm %s1128_s8, %s706_s24 }
  0x28   : > { %s604_s11 = sshll.u32 %s600_s17, 4  ;;  %s605_s11 = int_to_ptr.hbm [resolvable:$true] %s604_s11 }
  0x29   : > { %vm440_vm4 = vcmp.eq.s32.totalorder %v439_v44, 0  ;;  %s832_s14 = sshra.s32 %s605_s11, 4  ;;  %s833_s14 = int_to_ptr.hbm [resolvable:$true] %s832_s14 }
  0x2a   : > { %s834_s30 = scalar_lea.hbm %s833_s14, 8  ;;  %p839_p7 = scmp.lt.s32.totalorder %s833_s14, %s1128_s8 }
  0x2b   : > { %p835_p4 = scmp.ne.s32.totalorder %s833_s14, %s834_s30 }
  0x2c   : > { %409 = vrot.lane.b32.xlu0 %v407_v2, %s904_s13  ;;  %v366_v34 = vld [vmem:[#allocation4 + $0x1] sm:$0x1]  ;;  %v394_v47 = vld [vmem:[#allocation4 + $0x2] sm:$0x1]  ;;  %v422_v48 = vld [vmem:[#allocation4] sm:$0x1] }
  0x2d   : > { %s695_s13 = sshll.u32 %s1028_s15, 3  ;;  %p836_p5 = pnand %p835_p4, %p1005_p9 }
  0x2e   : > { %s340_s25 = scalar_lea.vmem [#allocation8], %s695_s13 }
  0x2f   : > { %p837_p6 = pneg %p836_p5 }
  0x96   : > { %v353_v3 = vpop.permute.xlu0 %352  ;;  %v382_v5 = vpop.permute.xlu1 %381 }
  0x97   : > { %v355_v4 = vmax.f32 %v696_v0, %v353_v3  ;;  %v384_v6 = vmax.f32 %v697_v1, %v382_v5  ;;  %v459_v3 = vld [vmem:[%s1122_s2] sm:$0x1] }
  0x99   : > { %360 = vrot.lane.b32.xlu2 %v355_v4, %s905_s19  ;;  %357 = vrot.lane.b32.xlu1 %v355_v4, %s906_s21 }
  0x9e   : > { %v410_v7 = vpop.permute.xlu0 %409 }
  0x9f   : > { %v412_v8 = vmax.f32 %v407_v2, %v410_v7  ;;  %v461_v2 = vld [vmem:[%s1122_s2 + $0x1] sm:$0x1]  ;;  %v464_v7 = vld [vmem:[%s1122_s2 + $0x2] sm:$0x1] }
  0xa1   : > { %386 = vrot.lane.b32.xlu1 %v384_v6, %s906_s21  ;;  %417 = vrot.lane.b32.xlu0 %v412_v8, %s905_s19 }
  0xa2   : > { %414 = vrot.lane.b32.xlu2 %v412_v8, %s906_s21 }
  0xaa   : > { %389 = vrot.lane.b32.xlu2 %v384_v6, %s905_s19 }
  0xf3   : > { %v361_v10 = vpop.permute.xlu2 %360 }
  0xfc   : > { %v415_v11 = vpop.permute.xlu2 %414 }
 0x104   : > { %v390_v17 = vpop.permute.xlu2 %389 }
 0x10b   : > { %v358_v12 = vpop.permute.xlu1 %357 }
 0x10c   : > { %v364_v13 = vsel %vm363_vm1, %v358_v12, %v361_v10  ;;  %v467_v12 = vld [vmem:[%s1123_s3] sm:$0x1] }
 0x10d   : > { %v365_v14 = vmax.f32 %v355_v4, %v364_v13 }
 0x10f   : > { %v368_v15 = vsel %vm367_vm2, %v365_v14, 0.0 }
 0x110   : > { %v369_v16 = vrot.slane %v368_v15, 4 }
 0x112   : > { %v370_v18 = vadd.f32 %v369_v16, %v368_v15  ;;  %v470_v16 = vld [vmem:[%s1124_s4] sm:$0x7] }
 0x113   : > { %v387_v19 = vpop.permute.xlu1 %386  ;;  %v418_v20 = vpop.permute.xlu0 %417 }
 0x114   : > { %v371_v21 = vrot.slane %v370_v18, 2  ;;  %v392_v22 = vsel %vm363_vm1, %v387_v19, %v390_v17  ;;  %v420_v23 = vsel %vm363_vm1, %v415_v11, %v418_v20  ;;  %v477_v20 = vld [vmem:[%s1125_s5] sm:$0x7] }
 0x115   : > { %v393_v24 = vmax.f32 %v384_v6, %v392_v22  ;;  %v421_v25 = vmax.f32 %v412_v8, %v420_v23 }
 0x116   : > { %v372_v26 = vadd.f32 %v371_v21, %v370_v18 }
 0x117   : > { %v395_v27 = vsel %vm367_vm2, %v393_v24, 0.0  ;;  %v404_v28 = vmax.f32 %v365_v14, %v393_v24  ;;  %v423_v29 = vsel %vm367_vm2, %v421_v25, 0.0  ;;  %433 = vst.msk [vmem:[#allocation2] sm:$0xff] %vm367_vm2, %v421_v25 }
 0x118   : > { %v373_v31 = vrot.slane %v372_v26, 1  ;;  %v396_v32 = vrot.slane %v395_v27, 4  ;;  %v424_v33 = vrot.slane %v423_v29, 4 }
 0x119   : > { %406 = vst.msk [vmem:[#allocation3] sm:$0xff] %vm367_vm2, %v404_v28 }
 0x11a   : > { %v374_v35 = vadd.f32 %v373_v31, %v372_v26  ;;  %v397_v36 = vadd.f32 %v396_v32, %v395_v27  ;;  %v425_v37 = vadd.f32 %v424_v33, %v423_v29  ;;  %v495_v32 = vld [vmem:[%s1127_s7] sm:$0x7] }
 0x11c   : > { %v375_v39 = vadd.f32 %v374_v35, %v366_v34  ;;  %v398_v40 = vrot.slane %v397_v36, 2  ;;  %v426_v41 = vrot.slane %v425_v37, 2 }
 0x11e   : > { %v399_v42 = vadd.f32 %v398_v40, %v397_v36  ;;  %v427_v43 = vadd.f32 %v426_v41, %v425_v37  ;;  %377 = vst.msk [vmem:[#allocation4 + $0x1] sm:$0x1] %vm376_vm3, %v375_v39  ;;  %v709_v40 = vld [vmem:[%s1121_s1] sm:$0xff] }
 0x11f   : > { %564 = vmatpush.bf16.msra.mxu1 %v709_v40  ;;  %548 = vmatpush.bf16.msra.mxu0 %v709_v40 }
 0x120   : > { %v400_v45 = vrot.slane %v399_v42, 1  ;;  %v428_v46 = vrot.slane %v427_v43, 1  ;;  %580 = vmatpush.bf16.msra.mxu2 %v709_v40 }
 0x122   : > { %v401_v49 = vadd.f32 %v400_v45, %v399_v42  ;;  %v429_v50 = vadd.f32 %v428_v46, %v427_v43  ;;  %v500_v42 = vld [vmem:[#allocation2] sm:$0xff]  ;;  %v506_v43 = vld [vmem:[#allocation3] sm:$0xff] }
 0x124   : > { %v402_v51 = vadd.f32 %v401_v49, %v394_v47  ;;  %v430_v52 = vadd.f32 %v429_v50, %v422_v48 }
 0x125   : > { %v447_v53 = vld [vmem:[#allocation4 + $0x1] sm:$0x1] }
 0x126   : > { %403 = vst.msk [vmem:[#allocation4 + $0x2] sm:$0x1] %vm376_vm3, %v402_v51  ;;  %v448_v54 = vsel %vm440_vm4, %v447_v53, 0.0 }
 0x127   : > { %431 = vst.msk [vmem:[#allocation4] sm:$0x1] %vm376_vm3, %v430_v52  ;;  %v449_v55 = vsel %vm376_vm3, %v448_v54, 0.0 }
 0x128   : > { %450 = vadd.xlane.f32.xlu1 %v449_v55 }
 0x12d   : > { %v453_v56 = vld [vmem:[#allocation4 + $0x2] sm:$0x1] }
 0x12e   : > { %v441_v57 = vld [vmem:[#allocation4] sm:$0x1]  ;;  %v454_v58 = vsel %vm440_vm4, %v453_v56, 0.0 }
 0x12f   : > { %v442_v59 = vsel %vm440_vm4, %v441_v57, 0.0  ;;  %v455_v60 = vsel %vm376_vm3, %v454_v58, 0.0 }
 0x130   : > { %v443_v61 = vsel %vm376_vm3, %v442_v59, 0.0  ;;  %456 = vadd.xlane.f32.xlu2 %v455_v60 }
 0x131   : > { %444 = vadd.xlane.f32.xlu0 %v443_v61 }
 0x141   : > { %490 = vrot.lane.b32.xlu1 %v479_v62, %s908_s26  ;;  %s602_s26 = sshll.u32 %s340_s25, 4  ;;  %s603_s26 = int_to_ptr.vmem [resolvable:$true] %s602_s26 }
 0x145   : > { %484 = vrot.lane.b32.xlu0 %v479_v62, %s906_s21 }
 0x19b   : > { %v451_v63 = vpop.xlane.xlu1 %450 }
 0x19c   : > { %v452_v0 = vmul.f32 0.015625, %v451_v63 }
 0x19e   : > { %v462_v8 = vmul.f32 %v461_v2, %v452_v0 }
 0x1a3   : > { %v457_v1 = vpop.xlane.xlu2 %456 }
 0x1a4   : > { %v445_v4 = vpop.xlane.xlu0 %444  ;;  %v458_v6 = vmul.f32 0.015625, %v457_v1 }
 0x1a5   : > { %v446_v5 = vmul.f32 0.015625, %v445_v4 }
 0x1a6   : > { %v465_v11 = vmul.f32 %v464_v7, %v458_v6 }
 0x1a7   : > { %v460_v9 = vmul.f32 %v459_v3, %v446_v5 }
 0x1a9   : > { %v463_v10 = vadd.f32 %v462_v8, %v460_v9 }
 0x1ab   : > { %v466_v13 = vadd.f32 %v465_v11, %v463_v10 }
 0x1ad   : > { %v468_v14 = vadd.f32 %v467_v12, %v466_v13 }
 0x1af   : > { %v469_v15 = vmax.f32 %v468_v14, 0.0 }
 0x1b1   : > { %v471_v17 = vperm.slane %v469_v15, 0 }
 0x1b3   : > { %v472_v18 = vmul.f32 %v471_v17, %v470_v16  ;;  %v491_v27 = vpop.permute.xlu1 %490 }
 0x1b5   : > { %v474_v19 = vsel %vm473_vm5, %v472_v18, 0.0 }
 0x1b6   : > { %475 = vadd.xlane.f32.xlu2 %v474_v19 }
 0x1b7   : > { %v485_v23 = vpop.permute.xlu0 %484 }
 0x229   : > { %v476_v21 = vpop.xlane.xlu2 %475 }
 0x22a   : > { %v478_v22 = vadd.f32 %v477_v20, %v476_v21 }
 0x22c   : > { %v480_v24 = vperm.slane %v478_v22, 0  ;;  %v482_v25 = vperm.slane %v478_v22, 1  ;;  %v489_v26 = vperm.slane %v478_v22, 2 }
 0x22e   : > { %v481_v28 = vmul.f32 %v480_v24, %v479_v62  ;;  %v487_v29 = vmul.f32 %v485_v23, %v482_v25  ;;  %v493_v31 = vmul.f32 %v491_v27, %v489_v26 }
 0x230   : > { %v488_v30 = vadd.f32 %v487_v29, %v481_v28 }
 0x232   : > { %v494_v33 = vadd.f32 %v493_v31, %v488_v30 }
 0x234   : > { %v496_v34 = vadd.f32 %v495_v32, %v494_v33 }
 0x236   : > { %v497_v35 = vadd.f32 0.49598983, %v496_v34  ;;  %v498_v36 = vadd.f32 -0.38875133, %v496_v34  ;;  %v499_v37 = vadd.f32 0.46353632, %v496_v34 }
 0x238   : > { %713 = vpush %v497_v35  ;;  %v508_v38 = vrot.slane %v498_v36, 1  ;;  %v515_v39 = vrot.slane %v499_v37, 2 }
 0x23a   : > { %715 = vpush %v508_v38 }
 0x23b   : > { %717 = vpush %v515_v39 }
 0x269   : > { %s714_s16 = spop %713 }
 0x26a   : > { %v503_v41 = vstv %s714_s16 }
 0x26b   : > { %s716_s23 = spop %715  ;;  %v505_v45 = vmul.f32 %v503_v41, %v500_v42 }
 0x26c   : > { %v510_v44 = vstv %s716_s23  ;;  %s718_s22 = spop %717 }
 0x26d   : > { %v512_v46 = vmul.f32 %v510_v44, %v506_v43  ;;  %v517_v48 = vstv %s718_s22  ;;  %s838_s22 = scalar_lea.hbm %s1128_s8, 16 }
 0x26e   : > { %p840_p8 = scmp.lt.s32.totalorder %s838_s22, %s834_s30 }
 0x26f   : > { %v513_v47 = vadd.f32 %v512_v46, %v505_v45 }
 0x270   : > { %p841_p10 = por %p840_p8, %p839_p7 }
 0x271   : > { %v519_v49 = vadd.f32 %v517_v48, %v513_v47 }
 0x272   : > { %p842_p13 = pnand %p841_p10, %p837_p6 }
 0x273   : > { %v520_v50 = vmax.f32 %v519_v49, 0.0 }
 0x275   : > { %v521_v51 = vmin.f32 %v520_v50, 1.0 }
 0x277   : > { %v522_v52 = vsub.f32 1.0, %v521_v51 }
 0x279   : > { %v525_v53 = vpack.c.bf16 %v522_v52, %v522_v52 }
 0x27b   : > { %v526_v54 = vunpack.c.l.bf16 %v525_v53  ;;  %703 = vmatmul.msk.bf16.vlgmr.msra.gmra.mxu1 %vm367_vm2, %v525_v53 }
 0x27d   : > { %v527_v55 = vsub.f32 %v522_v52, %v526_v54 }
 0x27f   : > { %v528_v56 = vpack.c.bf16 %v527_v55, %v527_v55 }
 0x281   : > { %v529_v57 = vunpack.c.l.bf16 %v528_v56  ;;  %702 = vmatmul.msk.bf16.vlgmr.msra.gmra.mxu0 %vm367_vm2, %v528_v56 }
 0x283   : > { %v530_v58 = vsub.f32 %v527_v55, %v529_v57 }
 0x285   : > { %v531_v59 = vpack.c.bf16 %v530_v58, %v530_v58 }
 0x287   : > { %704 = vmatmul.msk.bf16.vlgmr.msra.gmra.mxu2 %vm367_vm2, %v531_v59 }
 0x2f8   : > { %v566_v60 = vpop.f32.mrf.mxu1 }
 0x2fe   : > { %v550_v61 = vpop.f32.mrf.mxu0 }
 0x2ff   : > { %v567_v0 = vadd.f32 %v566_v60, %v550_v61 }
 0x300   : > { %v568_v62 = vpop.f32.mrf.mxu1 }
 0x306   : > { %v552_v63 = vpop.f32.mrf.mxu0 }
 0x30a   : > { %v582_v1 = vpop.f32.mrf.mxu2 }
 0x30b   : > { %v586_v2 = vadd.f32 %v582_v1, %v567_v0 }
 0x30d   : > { %588 = vst.msk [vmem:[%s340_s25] sm:$0xff] %vm587_vm6, %v586_v2 }
 0x30e   : > { %845 = shalt.err (!%p842_p13)
}
 0x30f   : > { %721 = dma.vmem_to_hbm [thread:$0]  (%p1005_p9), %s603_s26, 128, %s605_s11, %s590_s12  }
 0x312   : > { %v584_v3 = vpop.f32.mrf.mxu2 }
 0x313 PF: > { %s616_s15 = sand.u32 1, %s880_s27   ;;  %p728_p0 = pnand %p692_p12, %p1012_p11 }
 0x314   : > { %s617_s19 = scalar_lea.sflag [#allocation7], %s616_s15 }
 0x315   : > { %p729_p1 = pneg %p728_p0 }
 0x317   : > { %875 = dma.done.wait (%p729_p1), %s617_s19, 128  }
 0x318   : > { %877 = vsyncadd (%p729_p1), %s617_s19, 4294967168  ;;  %s24_s10 = sadd.s32 1, %s900_s10   ;;  %s1136_s18 = sld [smem:[#allocation12_spill]] }
 0x319   : > { %p21_p2 = scmp.ge.s32.totalorder %s24_s10, 4   ;;  %s1137_s21 = sld [smem:[#allocation11_spill]] }
 0x31a   : > { %s1138_s27 = smov %s884_s28  ;;  %s1139_s28 = smov %s888_s29 }
 0x31b   : > { %s1141_s30 = smov %s896_s9  ;;  %23 = sbr.rel (!%p21_p2) target bundleno = 6 (0x6), region = 109 }
 0x31e   : > { %s1140_s29 = smov %s1136_s18 }
 0x31f   : > { %s1142_s9 = smov %s1137_s21 }
 0x320   :  { %623 = vsyncpa [#allocation6], 1 }
 0x321   :  { %625 = vsyncpa [#allocation6 + $0x1], 1 }
 0x322   :  { %626 = vsyncpa [#allocation7], 1 }
 0x323   :  { %628 = vsyncpa [#allocation7 + $0x1], 1 }

</bundles_post_ra>
